<compile_context>
chip_gen: v7x
topology: tpu7x:2x2x1
jax: 0.10.0
libtpu: 0.0.40
codegen_flags: <defaults>
</compile_context>

<pallas_src>
import functools

import jax
import jax.numpy as jnp
from jax import lax
from jax.experimental import pallas as pl
from jax.experimental.pallas import tpu as pltpu


# ----------------------------- Pallas kernels ------------------------------ #

def _proj_kernel(x_ref, w_ref, b_ref, o_ref):
    """One big MXU matmul: (T*B, D) @ (D, 8H) + bias (both directions at once)."""
    o_ref[...] = (jnp.dot(x_ref[...], w_ref[...],
                          preferred_element_type=jnp.float32) + b_ref[...])


def _bilstm_seq_kernel(with_fc, *refs):
    """Fused forward+backward LSTM recurrence over the full sequence.

    Inputs (refs, in order):
      g_ref:     (T, B, 8H)  precomputed input gates [fwd 4H | bwd 4H], bias already folded in
      whh_f_ref: (H, 4H)     W_hh_forward^T
      whh_b_ref: (H, 4H)     W_hh_backward^T
      [fcw_ref:  (2H, Cp)    padded FC weight^T   -- only when with_fc]
      [fcb_ref:  (1, Cp)     padded FC bias       -- only when with_fc]
    Outputs:
      out_f_ref: (T, B, H)   forward hidden states
      out_b_ref: (T, B, H)   backward hidden states (already in natural time order)
      [logits_ref: (B, Cp)   FC(out[:, -1, :])     -- only when with_fc]
    Scratch: h_f, c_f, h_b, c_b: (B, H) recurrent state.
    """
    if with_fc:
        (g_ref, whh_f_ref, whh_b_ref, fcw_ref, fcb_ref,
         out_f_ref, out_b_ref, logits_ref,
         h_f, c_f, h_b, c_b) = refs
    else:
        (g_ref, whh_f_ref, whh_b_ref,
         out_f_ref, out_b_ref,
         h_f, c_f, h_b, c_b) = refs

    T, B, _ = g_ref.shape
    H = h_f.shape[1]
    H4 = 4 * H

    h_f[...] = jnp.zeros_like(h_f)
    c_f[...] = jnp.zeros_like(c_f)
    h_b[...] = jnp.zeros_like(h_b)
    c_b[...] = jnp.zeros_like(c_b)

    # Lane mask selecting the "g" gate block [2H, 3H) out of the 4H-wide pre-activation.
    lane = lax.broadcasted_iota(jnp.int32, (B, H4), 1)
    is_g = jnp.logical_and(lane >= 2 * H, lane < 3 * H)

    def cell(pre, c_prev):
        # One whole-width sigmoid + one whole-width tanh, then a lane-select, instead of
        # four separate 32-lane transcendental launches.
        act = jnp.where(is_g, jnp.tanh(pre), jax.nn.sigmoid(pre))
        i = act[:, 0 * H:1 * H]
        f = act[:, 1 * H:2 * H]
        g = act[:, 2 * H:3 * H]
        o = act[:, 3 * H:4 * H]
        c_new = f * c_prev + i * g
        h_new = o * jnp.tanh(c_new)
        return h_new, c_new

    def step(s, carry):
        tb = T - 1 - s

        # Forward direction processes timestep s.
        gx_f = g_ref[s]                                       # (B, 8H)
        pre_f = gx_f[:, :H4] + jnp.dot(h_f[...], whh_f_ref[...],
                                       preferred_element_type=jnp.float32)
        hf, cf = cell(pre_f, c_f[...])
        h_f[...] = hf
        c_f[...] = cf
        out_f_ref[s] = hf

        # Backward direction processes timestep T-1-s.
        gx_b = g_ref[tb]                                      # (B, 8H)
        pre_b = gx_b[:, H4:] + jnp.dot(h_b[...], whh_b_ref[...],
                                       preferred_element_type=jnp.float32)
        hb, cb = cell(pre_b, c_b[...])
        h_b[...] = hb
        c_b[...] = cb
        out_b_ref[tb] = hb
        return carry

    # Fully unroll the (short) recurrence so the two directions' independent work interleaves.
    lax.fori_loop(0, T, step, 0, unroll=True)

    if with_fc:
        # out[:, -1, :] == concat(forward h at t=T-1, backward h at t=T-1).
        # h_f currently holds the final forward hidden; out_b_ref[T-1] was written at s == 0.
        last_b = out_b_ref[T - 1]
        logits_ref[...] = (
            jnp.dot(h_f[...], fcw_ref[0:H, :], preferred_element_type=jnp.float32)
            + jnp.dot(last_b, fcw_ref[H:2 * H, :], preferred_element_type=jnp.float32)
            + fcb_ref[...])


# ------------------------------- Wrappers ---------------------------------- #

def _proj(x2, w, b):
    """Batched input projection: x2 (T*B, D), w (D, 8H), b (1, 8H) -> (T*B, 8H)."""
    TB, D = x2.shape
    G = w.shape[1]
    return pl.pallas_call(
        _proj_kernel,
        out_shape=jax.ShapeDtypeStruct((TB, G), jnp.float32),
        grid=(1,),
        in_specs=[
            pl.BlockSpec((TB, D), lambda i: (0, 0)),
            pl.BlockSpec((D, G), lambda i: (0, 0)),
            pl.BlockSpec((1, G), lambda i: (0, 0)),
        ],
        out_specs=pl.BlockSpec((TB, G), lambda i: (0, 0)),
        compiler_params=pltpu.CompilerParams(dimension_semantics=("arbitrary",)),
    )(x2, w, b)


def _bilstm_layer(gates_tb, whh_fT, whh_bT, fc_w=None, fc_b=None):
    """Fused bi-directional recurrence for one layer.

    gates_tb: (T, B, 8H) precomputed input gates; whh_*T: (H, 4H).
    If fc_w/fc_b are given, the final Linear (on the last timestep) is fused in and the
    padded logits (B, Cp) are returned as a third output.
    """
    T, B, G2 = gates_tb.shape
    H = whh_fT.shape[0]
    with_fc = fc_w is not None
    kernel = functools.partial(_bilstm_seq_kernel, with_fc)

    in_specs = [
        pl.BlockSpec((T, B, G2), lambda i: (0, 0, 0)),
        pl.BlockSpec((H, 4 * H), lambda i: (0, 0)),
        pl.BlockSpec((H, 4 * H), lambda i: (0, 0)),
    ]
    inputs = [gates_tb, whh_fT, whh_bT]

    out_shapes = [jax.ShapeDtypeStruct((T, B, H), jnp.float32),
                  jax.ShapeDtypeStruct((T, B, H), jnp.float32)]
    out_specs = [pl.BlockSpec((T, B, H), lambda i: (0, 0, 0)),
                 pl.BlockSpec((T, B, H), lambda i: (0, 0, 0))]

    if with_fc:
        Cp = fc_w.shape[1]
        in_specs += [pl.BlockSpec((2 * H, Cp), lambda i: (0, 0)),
                     pl.BlockSpec((1, Cp), lambda i: (0, 0))]
        inputs += [fc_w, fc_b]
        out_shapes.append(jax.ShapeDtypeStruct((B, Cp), jnp.float32))
        out_specs.append(pl.BlockSpec((B, Cp), lambda i: (0, 0)))

    outs = pl.pallas_call(
        kernel,
        out_shape=tuple(out_shapes),
        grid=(1,),
        in_specs=in_specs,
        out_specs=tuple(out_specs),
        scratch_shapes=[pltpu.VMEM((B, H), jnp.float32)] * 4,   # h_f, c_f, h_b, c_b
        compiler_params=pltpu.CompilerParams(dimension_semantics=("arbitrary",)),
    )(*inputs)

    if with_fc:
        out_f, out_b, logits = outs
        return out_f, out_b, logits
    out_f, out_b = outs
    return out_f, out_b, None


def prepare_params(params, hidden_size, num_classes, lane_pad=128):
    """One-time weight prep: transposes, direction concat, bias folding, FC lane padding."""
    H = hidden_size
    prepped = {"layers": []}
    for dirs in params["lstm"]:
        wih_f, whh_f, bih_f, bhh_f = dirs[0]
        wih_b, whh_b, bih_b, bhh_b = dirs[1]
        wx = jnp.concatenate([wih_f.T, wih_b.T], axis=1).astype(jnp.float32)      # (D, 8H)
        b = jnp.concatenate([bih_f + bhh_f, bih_b + bhh_b]).reshape(1, 8 * H)
        prepped["layers"].append({
            "wx": wx,
            "b": b.astype(jnp.float32),
            "whh_f": jnp.asarray(whh_f.T, jnp.float32),                            # (H, 4H)
            "whh_b": jnp.asarray(whh_b.T, jnp.float32),
        })
    C = num_classes
    Cp = ((C + lane_pad - 1) // lane_pad) * lane_pad
    prepped["fc_w"] = jnp.zeros((2 * H, Cp), jnp.float32).at[:, :C].set(
        jnp.asarray(params["fc_w"].T, jnp.float32))
    prepped["fc_b"] = jnp.zeros((1, Cp), jnp.float32).at[:, :C].set(
        jnp.asarray(params["fc_b"], jnp.float32))
    prepped["num_classes"] = C
    return prepped


def birnn_forward(x, prepped, hidden_size, num_layers):
    """x: (B, T, input_size) -> (B, num_classes). Matches PyTorch BiRNN.forward."""
    B, T, _ = x.shape
    H = hidden_size
    layer_in = jnp.transpose(x, (1, 0, 2)).astype(jnp.float32)    # (T, B, D) time-major
    logits_padded = None

    for l in range(num_layers):
        p = prepped["layers"][l]
        D = layer_in.shape[-1]
        # Hoisted input projection for BOTH directions (bias folded in): one big matmul.
        x2 = layer_in.reshape(T * B, D)
        gates = _proj(x2, p["wx"], p["b"]).reshape(T, B, 8 * H)

        is_last = (l == num_layers - 1)
        if is_last:
            _, _, logits_padded = _bilstm_layer(
                gates, p["whh_f"], p["whh_b"], prepped["fc_w"], prepped["fc_b"])
        else:
            out_f, out_b, _ = _bilstm_layer(gates, p["whh_f"], p["whh_b"])
            layer_in = jnp.concatenate([out_f, out_b], axis=-1)   # (T, B, 2H)

    return logits_padded[:, :prepped["num_classes"]]


# --------------------------- Parameter init -------------------------------- #

def init_params(key, input_size, hidden_size, num_layers, num_classes):
    """PyTorch-style uniform(-1/sqrt(H), 1/sqrt(H)) init, deterministic."""
    k = 1.0 / jnp.sqrt(hidden_size)
    params = {"lstm": []}
    for l in range(num_layers):
        d_in = input_size if l == 0 else 2 * hidden_size
        dirs = []
        for _ in range(2):  # forward, backward
            key, k1, k2, k3, k4 = jax.random.split(key, 5)
            wih = jax.random.uniform(k1, (4 * hidden_size, d_in), jnp.float32, -k, k)
            whh = jax.random.uniform(k2, (4 * hidden_size, hidden_size), jnp.float32, -k, k)
            bih = jax.random.uniform(k3, (4 * hidden_size,), jnp.float32, -k, k)
            bhh = jax.random.uniform(k4, (4 * hidden_size,), jnp.float32, -k, k)
            dirs.append((wih, whh, bih, bhh))
        params["lstm"].append(dirs)
    kf = 1.0 / jnp.sqrt(2 * hidden_size)
    key, k1, k2 = jax.random.split(key, 3)
    params["fc_w"] = jax.random.uniform(k1, (num_classes, 2 * hidden_size), jnp.float32, -kf, kf)
    params["fc_b"] = jax.random.uniform(k2, (num_classes,), jnp.float32, -kf, kf)
    return params


# ---------------------- Pure-JAX reference (sanity check) ------------------ #

def _cell_ref(x_t, h, c, wih, whh, bih, bhh):
    gates = x_t @ wih.T + bih + h @ whh.T + bhh
    i, f, g, o = jnp.split(gates, 4, axis=-1)
    i = jax.nn.sigmoid(i); f = jax.nn.sigmoid(f)
    g = jnp.tanh(g); o = jax.nn.sigmoid(o)
    c = f * c + i * g
    return o * jnp.tanh(c), c


def birnn_ref(x, params, hidden_size, num_layers):
    B, T, _ = x.shape
    layer_in = x
    for l in range(num_layers):
        wih_f, whh_f, bih_f, bhh_f = params["lstm"][l][0]
        wih_b, whh_b, bih_b, bhh_b = params["lstm"][l][1]
        h = jnp.zeros((B, hidden_size)); c = jnp.zeros((B, hidden_size))
        outs_f = []
        for t in range(T):
            h, c = _cell_ref(layer_in[:, t], h, c, wih_f, whh_f, bih_f, bhh_f)
            outs_f.append(h)
        h = jnp.zeros((B, hidden_size)); c = jnp.zeros((B, hidden_size))
        outs_b = [None] * T
        for t in range(T - 1, -1, -1):
            h, c = _cell_ref(layer_in[:, t], h, c, wih_b, whh_b, bih_b, bhh_b)
            outs_b[t] = h
        layer_in = jnp.concatenate(
            [jnp.stack(outs_f, axis=1), jnp.stack(outs_b, axis=1)], axis=-1)
    last = layer_in[:, -1, :]
    return last @ params["fc_w"].T + params["fc_b"]


# ---------------------------------- Main ------------------------------------ #

if __name__ == "__main__":
    input_size = 16
    hidden_size = 32
    num_layers = 2
    num_classes = 10
    batch = 2
    seq_len = 8

    key = jax.random.PRNGKey(0)
    key, kx, kp = jax.random.split(key, 3)
    x = jax.random.normal(kx, (batch, seq_len, input_size), jnp.float32)
    params = init_params(kp, input_size, hidden_size, num_layers, num_classes)
    prepped = prepare_params(params, hidden_size, num_classes)

    out = birnn_forward(x, prepped, hidden_size, num_layers)
    out = jax.block_until_ready(out)

    ref = birnn_ref(x, params, hidden_size, num_layers)
    assert out.shape == (batch, num_classes)
    assert jnp.allclose(out, ref, rtol=2e-3, atol=2e-3), "mismatch vs pure-JAX reference"

    print("KERNEL_OK")
</pallas_src>

<mosaic_0001>
module attributes {stable_mosaic.version = 11 : i64} {
  func.func @_proj_kernel(%arg0: i32, %arg1: memref<16x16xf32, #tpu.memory_space<vmem>>, %arg2: memref<16x256xf32, #tpu.memory_space<vmem>>, %arg3: memref<1x256xf32, #tpu.memory_space<vmem>>, %arg4: memref<16x256xf32, #tpu.memory_space<vmem>>) attributes {dimension_semantics = [#tpu.dimension_semantics<arbitrary>], iteration_bounds = array<i64: 1>, scalar_prefetch = 0 : i64, scratch_operands = 0 : i64, tpu.core_type = #tpu.core_type<tc>, window_params = [{pipeline_mode = #tpu.pipeline_mode<synchronous>, transform_indices = @transform_0, window_bounds = array<i64: 16, 16>}, {pipeline_mode = #tpu.pipeline_mode<synchronous>, transform_indices = @transform_1, window_bounds = array<i64: 16, 256>}, {pipeline_mode = #tpu.pipeline_mode<synchronous>, transform_indices = @transform_2, window_bounds = array<i64: 1, 256>}, {pipeline_mode = #tpu.pipeline_mode<synchronous>, transform_indices = @transform_3, window_bounds = array<i64: 16, 256>}]} {
    %c0 = arith.constant 0 : index
    %c0_0 = arith.constant 0 : index
    %0 = vector.load %arg1[%c0, %c0_0] : memref<16x16xf32, #tpu.memory_space<vmem>>, vector<16x16xf32>
    %c0_1 = arith.constant 0 : index
    %c0_2 = arith.constant 0 : index
    %1 = vector.load %arg2[%c0_1, %c0_2] : memref<16x256xf32, #tpu.memory_space<vmem>>, vector<16x256xf32>
    %cst = arith.constant dense<0.000000e+00> : vector<16x256xf32>
    %2 = tpu.matmul %0, %1, %cst {dimension_numbers = #tpu.dot_dimension_numbers<[1], [0], [0], [1], [0, 0, 1, 1], [], []>} : vector<16x16xf32>, vector<16x256xf32>, vector<16x256xf32> -> vector<16x256xf32>
    %c0_3 = arith.constant 0 : index
    %c0_4 = arith.constant 0 : index
    %3 = vector.load %arg3[%c0_3, %c0_4] : memref<1x256xf32, #tpu.memory_space<vmem>>, vector<1x256xf32>
    %4 = vector.broadcast %3 : vector<1x256xf32> to vector<16x256xf32>
    %5 = arith.addf %2, %4 : vector<16x256xf32>
    %c0_5 = arith.constant 0 : index
    %c0_6 = arith.constant 0 : index
    %6 = vector.load %arg4[%c0_5, %c0_6] : memref<16x256xf32, #tpu.memory_space<vmem>>, vector<16x256xf32>
    tpu.vector_store %arg4[%c0_5, %c0_6], %5 {strides = array<i32>} : memref<16x256xf32, #tpu.memory_space<vmem>>, vector<16x256xf32>,
    return
  }
  func.func @transform_0(%arg0: i32) -> (i32, i32) {
    %c0_i32 = arith.constant 0 : i32
    %c0_i32_0 = arith.constant 0 : i32
    %c0_i32_1 = arith.constant 0 : i32
    return %c0_i32, %c0_i32_0 : i32, i32
  }
  func.func @transform_1(%arg0: i32) -> (i32, i32) {
    %c0_i32 = arith.constant 0 : i32
    %c0_i32_0 = arith.constant 0 : i32
    %c0_i32_1 = arith.constant 0 : i32
    return %c0_i32, %c0_i32_0 : i32, i32
  }
  func.func @transform_2(%arg0: i32) -> (i32, i32) {
    %c0_i32 = arith.constant 0 : i32
    %c0_i32_0 = arith.constant 0 : i32
    %c0_i32_1 = arith.constant 0 : i32
    return %c0_i32, %c0_i32_0 : i32, i32
  }
  func.func @transform_3(%arg0: i32) -> (i32, i32) {
    %c0_i32 = arith.constant 0 : i32
    %c0_i32_0 = arith.constant 0 : i32
    %c0_i32_1 = arith.constant 0 : i32
    return %c0_i32, %c0_i32_0 : i32, i32
  }
}

</mosaic_0001>

<bundles_post_ra>
// kernel: tpu_custom_call.1
= control target key start
LH: loop header
LB: loop body
LE: loop exit
PB: predicated region body
PF: predicated region fallthrough
CT: control target
= control target key end

     0   :  { %8 = vsyncpa [#allocation3], 0  ;;  %s328_s0 = inlined_call_operand.hbm [shape: f32[16,16], index: 0, kind: input, shape index: {}]   ;;  %s329_s1 = inlined_call_operand.hbm [shape: f32[16,256], index: 1, kind: input, shape index: {}]   ;;  %s330_s2 = inlined_call_operand.vmem [shape: f32[1,256], index: 2, kind: input, shape index: {}]   ;;  %s331_s3 = inlined_call_operand.hbm [shape: f32[16,256], index: 3, kind: output, shape index: {}]  }
   0x1   :  { %9 = vsyncpa [#allocation6], 0 }
   0x2   :  { %10 = vsyncpa [#allocation4], 0  ;;  %s255_s12 = smov [#allocation2]   ;;  %s183_s16 = scalar_lea.hbm %s328_s0, 256 }
   0x3   :  { %s16_s13 = sshll.u32 %s255_s12, 4  ;;  %p184_p0 = scmp.ne.s32.totalorder %s328_s0, %s183_s16  ;;  %s17_s13 = int_to_ptr.vmem [resolvable:$true] %s16_s13 }
   0x4   :  { %p187_p1 = scmp.lt.u32.totalorder %s183_s16, %s328_s0 }
   0x6   :  { %p189_p2 = pnand %p187_p1, %p184_p0 }
   0x8   :  { %192 = shalt.err (!%p189_p2)
}
   0x9   :  { %s193_s21 = scalar_lea.vmem %s17_s13, 256  ;;  %p198_p4 = scmp.lt.s32.totalorder %s17_s13, %s17_s13 }
   0xa   :  { %p194_p3 = scmp.ne.s32.totalorder %s17_s13, %s193_s21  ;;  %p199_p5 = scmp.lt.s32.totalorder %s193_s21, %s193_s21 }
   0xc   :  { %p200_p6 = por %p199_p5, %p198_p4 }
   0xe   :  { %p201_p7 = pnand %p200_p6, %p194_p3 }
  0x10   :  { %204 = shalt.err (!%p201_p7)
}
  0x11   :  { %s256_s22 = smov 128   ;;  %s257_s23 = smov 8  }
  0x12   :  { %22 = dma.hbm_to_vmem [thread:$0]  %s328_s0, 256, %s17_s13, [#allocation3], %s256_s22, %s256_s22, %s257_s23  }
  0x13   :  { %s258_s26 = smov [#allocation5]   ;;  %s205_s30 = scalar_lea.hbm %s329_s1, 512 }
  0x14   :  { %s28_s27 = sshll.u32 %s258_s26, 4  ;;  %p206_p8 = scmp.ne.s32.totalorder %s329_s1, %s205_s30  ;;  %s29_s27 = int_to_ptr.vmem [resolvable:$true] %s28_s27 }
  0x15   :  { %p209_p9 = scmp.lt.u32.totalorder %s205_s30, %s329_s1 }
  0x17   :  { %p211_p10 = pnand %p209_p9, %p206_p8 }
  0x19   :  { %214 = shalt.err (!%p211_p10)
}
  0x1a   :  { %s215_s8 = scalar_lea.vmem %s29_s27, 512  ;;  %p220_p12 = scmp.lt.s32.totalorder %s29_s27, %s29_s27 }
  0x1b   :  { %p216_p11 = scmp.ne.s32.totalorder %s29_s27, %s215_s8  ;;  %p221_p13 = scmp.lt.s32.totalorder %s215_s8, %s215_s8 }
  0x1d   :  { %p222_p0 = por %p221_p13, %p220_p12 }
  0x1f   :  { %p223_p1 = pnand %p222_p0, %p216_p11 }
  0x21   :  { %226 = shalt.err (!%p223_p1)
}
  0x22   :  { %s259_s0 = smov 256   ;;  %s260_s9 = smov 16  }
  0x23   :  { %34 = dma.hbm_to_vmem [thread:$0]  %s329_s1, 512, %s29_s27, [#allocation6], %s259_s0, %s259_s0, %s260_s9  }
  0x24   :  { %249 = dma.done.wait [#allocation3], 256  }
  0x25   :  { %250 = vsyncadd [#allocation3], 4294967040 }
  0x26   :  { %251 = dma.done.wait [#allocation6], 512  }
  0x27   :  { %252 = vsyncadd [#allocation6], 4294966784  ;;  %v261_v0 = vmov 0.0   ;;  %v46_v1 = vld [vmem:[#allocation5 + $0x8] sm:$0xff]  ;;  %v48_v2 = vld [vmem:[#allocation5 + $0x18] sm:$0xff]  ;;  %vm61_vm0 = vcmask 130048   ;;  %v51_v9 = vlaneseq }
  0x28   :  { %132 = vmatprep.mubr.f32.mxu0 %v261_v0  ;;  %138 = vmatprep.mubr.f32.mxu1 %v261_v0  ;;  %v45_v3 = vld [vmem:[#allocation5] sm:$0xff]  ;;  %v169_v4 = vpack.c.bf16 %v48_v2, %v46_v1  ;;  %v47_v5 = vld [vmem:[#allocation5 + $0x10] sm:$0xff]  ;;  %v44_v8 = vld [vmem:[#allocation2 + $0x8] sm:$0xff]  ;;  %s262_s13 = smov [#allocation7]  }
  0x29   :  { %v171_v6 = vpack.c.bf16 %v47_v5, %v45_v3  ;;  %v43_v7 = vld [vmem:[#allocation2] sm:$0xff]  ;;  %v52_v10 = vshrl.u32 %v51_v9, 7  ;;  %s154_s14 = sshll.u32 %s262_s13, 4  ;;  %s155_s14 = int_to_ptr.vmem [resolvable:$true] %s154_s14 }
  0x2a   :  { %170 = vmatprep.subr.bf16.mxu0 %v169_v4  ;;  %173 = vmatprep.subr.bf16.mxu1 %v169_v4  ;;  %v49_v12 = vld [vmem:[%s330_s2] sm:$0x3]  ;;  %s227_s15 = scalar_lea.vmem %s155_s14, 512  ;;  %p232_p3 = scmp.lt.s32.totalorder %s155_s14, %s155_s14 }
  0x2b   :  { %172 = vmatpush1.bf16.msra.mxu0 %v171_v6  ;;  %174 = vmatpush1.bf16.msra.mxu1 %v171_v6  ;;  %v53_v11 = vsub.s32 0, %v52_v10  ;;  %v57_v13 = vsub.s32 1, %v52_v10  ;;  %p228_p2 = scmp.ne.s32.totalorder %s155_s14, %s227_s15  ;;  %p233_p4 = scmp.lt.s32.totalorder %s227_s15, %s227_s15 }
  0x2d   :  { %v54_v14 = vrot.slane %v49_v12, %v53_v11  ;;  %v58_v15 = vrot.slane %v49_v12, %v57_v13  ;;  %p234_p5 = por %p233_p4, %p232_p3 }
  0x2e   :  { %167 = vmatmul.mubr.msk.f32.vlgmr.msra.gmra.mrb[0].mxu0 %vm61_vm0, %v43_v7  ;;  %168 = vmatmul.mubr.msk.f32.vlgmr.msra.gmra.mrb[0].mxu1 %vm61_vm0, %v44_v8 }
  0x2f   :  { %p235_p6 = pnand %p234_p5, %p228_p2 }
 0x101   :  { %v134_v16 = vpop.f32.mrb[0].mxu0  ;;  %v140_v17 = vpop.f32.mrb[0].mxu1 }
 0x102   :  { %v135_v18 = vadd.f32 %v134_v16, %v54_v14  ;;  %v141_v19 = vadd.f32 %v140_v17, %v54_v14  ;;  %v136_v20 = vpop.f32.mrb[1].mxu0  ;;  %v142_v21 = vpop.f32.mrb[1].mxu1 }
 0x103   :  { %v137_v22 = vadd.f32 %v136_v20, %v58_v15  ;;  %v143_v23 = vadd.f32 %v142_v21, %v58_v15 }
 0x104   :  { %145 = vst [vmem:[#allocation7] sm:$0xff] %v135_v18  ;;  %147 = vst [vmem:[#allocation7 + $0x10] sm:$0xff] %v141_v19 }
 0x105   :  { %146 = vst [vmem:[#allocation7 + $0x8] sm:$0xff] %v137_v22  ;;  %148 = vst [vmem:[#allocation7 + $0x18] sm:$0xff] %v143_v23 }
 0x106   :  { %238 = shalt.err (!%p235_p6)
}
 0x107   :  { %s239_s17 = scalar_lea.hbm %s331_s3, 512 }
 0x108   :  { %p240_p7 = scmp.ne.s32.totalorder %s331_s3, %s239_s17  ;;  %p243_p8 = scmp.lt.u32.totalorder %s239_s17, %s331_s3 }
 0x10a   :  { %p245_p9 = pnand %p243_p8, %p240_p7 }
 0x10c   :  { %248 = shalt.err (!%p245_p9)
}
 0x10d   :  { %160 = dma.vmem_to_hbm [thread:$0]  %s155_s14, 512, %s331_s3, [#allocation4], %s259_s0, %s259_s0, %s260_s9  }
 0x10e   :  { %253 = dma.done.wait [#allocation4], 512  }
 0x10f   :  { %254 = vsyncadd [#allocation4], 4294966784 }
 0x110   :  { %164 = vsyncpa [#allocation3], 1 }
 0x111   :  { %165 = vsyncpa [#allocation6], 1 }
 0x112   :  { %166 = vsyncpa [#allocation4], 1 }

</bundles_post_ra>
